<compile_context>
chip_gen: v7x
topology: tpu7x:2x2x1
jax: 0.10.0
libtpu: 0.0.40
codegen_flags: <defaults>
</compile_context>

<pallas_src>
import jax
import jax.numpy as jnp
from jax.experimental import pallas as pl
from jax.experimental.pallas import tpu as pltpu


def _round_up(x, m):
    return (x + m - 1) // m * m


def _cdiv(a, b):
    return (a + b - 1) // b


def _conv1x1_vpu_kernel(w_ref, b_ref, x_ref, o_ref):
    """Small-channel 1x1 conv tile: per-output-channel VPU broadcast-FMA.

    w_ref: SMEM (Cout, Cin) f32
    b_ref: SMEM (Cout,)     f32
    x_ref: VMEM (TB, Cin, TN)
    o_ref: VMEM (TB, Cout, TN)
    """
    tb, cin, tn = x_ref.shape
    cout = o_ref.shape[1]
    for o in range(cout):
        acc = jnp.full((tb, tn), b_ref[o], dtype=jnp.float32)
        for c in range(cin):
            acc = acc + w_ref[o, c] * x_ref[:, c, :].astype(jnp.float32)
        o_ref[:, o, :] = acc.astype(o_ref.dtype)


def _conv1x1_mxu_kernel(x_ref, w_ref, b_ref, o_ref):
    """General 1x1 conv tile: one MXU matmul with f32 accumulation.

    x_ref: VMEM (1, Cin, TN)
    w_ref: VMEM (Cout_pad, Cin)  PyTorch orientation, rows zero-padded to a multiple of 8
    b_ref: VMEM (Cout, 1) f32
    o_ref: VMEM (1, Cout, TN)
    """
    cout = o_ref.shape[1]
    y = jnp.dot(w_ref[...], x_ref[0], preferred_element_type=jnp.float32)  # (Cout_pad, TN)
    o_ref[0] = (y[:cout] + b_ref[...]).astype(o_ref.dtype)


def outconv_forward(x, weight, bias):
    """PyTorch `outconv.forward`: Conv2d(in_ch, out_ch, kernel_size=1)(x).

    x:      (B, Cin, H, W)    NCHW
    weight: (Cout, Cin, 1, 1) PyTorch Conv2d weight layout
    bias:   (Cout,)
    returns (B, Cout, H, W)   in x.dtype (f32 accumulation inside the kernel)
    """
    B, Cin, H, W = x.shape
    Cout = weight.shape[0]
    HW = H * W
    HW128 = _round_up(HW, 128)
    out_dtype = x.dtype
    in_item = jnp.dtype(x.dtype).itemsize
    out_item = jnp.dtype(out_dtype).itemsize

    # ---- Generation-aware VMEM budget --------------------------------------
    try:
        vmem_cap = int(pltpu.get_tpu_info().vmem_capacity_bytes)
    except Exception:  # no TPU info available (e.g. interpret/CPU tracing)
        vmem_cap = 128 * 1024 * 1024
    if vmem_cap <= 64 * 1024 * 1024:          # v7x-class: 64 MiB per TensorCore
        live_budget = 20 * 1024 * 1024
    else:                                      # v5e / v6e: 128 MiB physical
        live_budget = 40 * 1024 * 1024
    vmem_limit = int(min(vmem_cap, 2 * live_budget))

    # HBM bytes moved per (batch-row, spatial-column): Cin in + Cout out.
    per_col = Cin * in_item + Cout * out_item
    # Columns per grid step so the double-buffered in+out blocks fit the budget.
    max_cols = max(128, live_budget // (2 * per_col))

    x2 = x.reshape(B, Cin, HW)  # free: NCHW is contiguous; no transpose, no HBM pad.

    flops = 2 * B * HW * Cin * Cout + B * HW * Cout
    bytes_accessed = (B * HW * Cin * in_item + B * HW * Cout * out_item
                      + Cout * Cin * 4 + Cout * 4)
    cost = pl.CostEstimate(flops=flops, transcendentals=0,
                           bytes_accessed=bytes_accessed)

    use_vpu = (Cout <= 8) and (Cin <= 16)

    if use_vpu:
        # ---- Small-channel path: VPU FMA, batch + spatial tiling ------------
        if HW128 <= max_cols:
            TN = HW128
            TB = max(1, min(B, max_cols // HW128))
        else:
            TB = 1
            TN = min(HW128, max(128, (max_cols // 128) * 128))
        grid_b = _cdiv(B, TB)
        grid_n = _cdiv(HW, TN)
        # Keep >= 2 grid steps so both v7x TensorCores get work (harmless elsewhere).
        if grid_b * grid_n < 2:
            if B >= 2:
                TB = _cdiv(B, 2)
                grid_b = _cdiv(B, TB)
            elif HW128 >= 256:
                TN = _round_up(_cdiv(HW128, 2), 128)
                grid_n = _cdiv(HW, TN)

        w2 = weight.reshape(Cout, Cin).astype(jnp.float32)   # tiny; lives in SMEM
        b2 = bias.reshape(Cout).astype(jnp.float32)

        y = pl.pallas_call(
            _conv1x1_vpu_kernel,
            out_shape=jax.ShapeDtypeStruct((B, Cout, HW), out_dtype),
            grid=(grid_b, grid_n),
            in_specs=[
                pl.BlockSpec(memory_space=pltpu.MemorySpace.SMEM),
                pl.BlockSpec(memory_space=pltpu.MemorySpace.SMEM),
                pl.BlockSpec((TB, Cin, TN), lambda b, j: (b, 0, j)),
            ],
            out_specs=pl.BlockSpec((TB, Cout, TN), lambda b, j: (b, 0, j)),
            compiler_params=pltpu.CompilerParams(
                dimension_semantics=("parallel", "parallel"),
                vmem_limit_bytes=vmem_limit),
            cost_estimate=cost,
        )(w2, b2, x2)
    else:
        # ---- General path: MXU matmul per (batch, spatial-tile) -------------
        Cout_pad = _round_up(Cout, 8)
        w_bytes = Cout_pad * Cin * in_item
        avail = max(2 * per_col * 128, live_budget - 2 * w_bytes)
        TN = min(HW128, max(128, (avail // (2 * per_col)) // 128 * 128))
        if B == 1 and _cdiv(HW, TN) < 2 and HW128 >= 256:
            TN = min(TN, _round_up(_cdiv(HW128, 2), 128))
        grid_n = _cdiv(HW, TN)
        # TODO(synk): for extreme Cin where even TN=128 exceeds the VMEM budget, add a K-tile
        # grid axis ("arbitrary") with a VMEM f32 accumulator instead of relying on limit headroom.

        w2 = weight.reshape(Cout, Cin).astype(x.dtype)
        w2 = jnp.pad(w2, ((0, Cout_pad - Cout), (0, 0)))
        b2 = bias.reshape(Cout, 1).astype(jnp.float32)

        y = pl.pallas_call(
            _conv1x1_mxu_kernel,
            out_shape=jax.ShapeDtypeStruct((B, Cout, HW), out_dtype),
            grid=(B, grid_n),
            in_specs=[
                pl.BlockSpec((1, Cin, TN), lambda b, j: (b, 0, j)),
                pl.BlockSpec((Cout_pad, Cin), lambda b, j: (0, 0)),
                pl.BlockSpec((Cout, 1), lambda b, j: (0, 0)),
            ],
            out_specs=pl.BlockSpec((1, Cout, TN), lambda b, j: (b, 0, j)),
            compiler_params=pltpu.CompilerParams(
                dimension_semantics=("parallel", "parallel"),
                vmem_limit_bytes=vmem_limit),
            cost_estimate=cost,
        )(x2, w2, b2)

    return y.reshape(B, Cout, H, W)


def _ref_conv1x1(x, w, b):
    Cout, Cin = w.shape[0], w.shape[1]
    return (jnp.einsum('oi,bihw->bohw', w.reshape(Cout, Cin), x,
                       precision=jax.lax.Precision.HIGHEST)
            + b[None, :, None, None])


def _make_inputs(key, B, Cin, Cout, H, W):
    kx, kw, kb = jax.random.split(key, 3)
    # Round inputs to bf16-exact values so the check is tight regardless of MXU pass count.
    x = jax.random.normal(kx, (B, Cin, H, W), jnp.float32).astype(jnp.bfloat16).astype(jnp.float32)
    w = jax.random.normal(kw, (Cout, Cin, 1, 1), jnp.float32).astype(jnp.bfloat16).astype(jnp.float32)
    b = jax.random.normal(kb, (Cout,), jnp.float32).astype(jnp.bfloat16).astype(jnp.float32)
    return x, w, b


if __name__ == "__main__":
    fwd = jax.jit(outconv_forward)
    key = jax.random.PRNGKey(0)
    k1, k2, k3 = jax.random.split(key, 3)

    # 1) Module-consistent small shape (VPU small-channel path): B=2, in_ch=4, out_ch=3, 16x16.
    x, w, b = _make_inputs(k1, 2, 4, 3, 16, 16)
    out = jax.block_until_ready(fwd(x, w, b))
    assert out.shape == (2, 3, 16, 16)
    ref = _ref_conv1x1(x, w, b)
    err = float(jnp.max(jnp.abs(out - ref)))
    assert jnp.allclose(out, ref, atol=1e-5, rtol=1e-5), err

    # 2) Larger channel count (MXU path): B=2, in_ch=32, out_ch=16, 16x16.
    x, w, b = _make_inputs(k2, 2, 32, 16, 16, 16)
    out = jax.block_until_ready(fwd(x, w, b))
    assert out.shape == (2, 16, 16, 16)
    ref = _ref_conv1x1(x, w, b)
    err = float(jnp.max(jnp.abs(out - ref)))
    assert jnp.allclose(out, ref, atol=1e-4, rtol=1e-4), err

    # 3) Ragged spatial size (no HBM pad; masked boundary block): B=1, in_ch=4, out_ch=3, 20x20.
    x, w, b = _make_inputs(k3, 1, 4, 3, 20, 20)
    out = jax.block_until_ready(fwd(x, w, b))
    assert out.shape == (1, 3, 20, 20)
    ref = _ref_conv1x1(x, w, b)
    err = float(jnp.max(jnp.abs(out - ref)))
    assert jnp.allclose(out, ref, atol=1e-5, rtol=1e-5), err

    print("KERNEL_OK")
</pallas_src>

<mosaic_0001>
module attributes {stable_mosaic.version = 11 : i64} {
  func.func @_conv1x1_vpu_kernel(%arg0: i32, %arg1: i32, %arg2: memref<3x4xf32, #tpu.memory_space<smem>>, %arg3: memref<3xf32, #tpu.memory_space<smem>>, %arg4: memref<1x4x256xf32, #tpu.memory_space<vmem>>, %arg5: memref<1x3x256xf32, #tpu.memory_space<vmem>>) attributes {dimension_semantics = [#tpu.dimension_semantics<parallel>, #tpu.dimension_semantics<parallel>], iteration_bounds = array<i64: 2, 1>, scalar_prefetch = 0 : i64, scratch_operands = 0 : i64, tpu.core_type = #tpu.core_type<tc>, window_params = [{transform_indices = @transform_0, window_bounds = array<i64: 3, 4>}, {transform_indices = @transform_1, window_bounds = array<i64: 3>}, {transform_indices = @transform_2, window_bounds = array<i64: 1, 4, 256>}, {transform_indices = @transform_3, window_bounds = array<i64: 1, 3, 256>}]} {
    %c0 = arith.constant 0 : index
    %0 = memref.load %arg3[%c0] : memref<3xf32, #tpu.memory_space<smem>>
    %1 = vector.broadcast %0 : f32 to vector<1x256xf32>
    %c0_0 = arith.constant 0 : index
    %c0_1 = arith.constant 0 : index
    %2 = memref.load %arg2[%c0_0, %c0_1] : memref<3x4xf32, #tpu.memory_space<smem>>
    %c0_2 = arith.constant 0 : index
    %c0_3 = arith.constant 0 : index
    %c0_4 = arith.constant 0 : index
    %3 = vector.load %arg4[%c0_2, %c0_3, %c0_4] : memref<1x4x256xf32, #tpu.memory_space<vmem>>, vector<1x1x256xf32>
    %4 = vector.shape_cast %3 : vector<1x1x256xf32> to vector<1x256xf32>
    %5 = vector.broadcast %2 : f32 to vector<1x256xf32>
    %6 = arith.mulf %5, %4 : vector<1x256xf32>
    %7 = arith.addf %1, %6 : vector<1x256xf32>
    %c0_5 = arith.constant 0 : index
    %c1 = arith.constant 1 : index
    %8 = memref.load %arg2[%c0_5, %c1] : memref<3x4xf32, #tpu.memory_space<smem>>
    %c0_6 = arith.constant 0 : index
    %c1_7 = arith.constant 1 : index
    %c0_8 = arith.constant 0 : index
    %9 = vector.load %arg4[%c0_6, %c1_7, %c0_8] : memref<1x4x256xf32, #tpu.memory_space<vmem>>, vector<1x1x256xf32>
    %10 = vector.shape_cast %9 : vector<1x1x256xf32> to vector<1x256xf32>
    %11 = vector.broadcast %8 : f32 to vector<1x256xf32>
    %12 = arith.mulf %11, %10 : vector<1x256xf32>
    %13 = arith.addf %7, %12 : vector<1x256xf32>
    %c0_9 = arith.constant 0 : index
    %c2 = arith.constant 2 : index
    %14 = memref.load %arg2[%c0_9, %c2] : memref<3x4xf32, #tpu.memory_space<smem>>
    %c0_10 = arith.constant 0 : index
    %c2_11 = arith.constant 2 : index
    %c0_12 = arith.constant 0 : index
    %15 = vector.load %arg4[%c0_10, %c2_11, %c0_12] : memref<1x4x256xf32, #tpu.memory_space<vmem>>, vector<1x1x256xf32>
    %16 = vector.shape_cast %15 : vector<1x1x256xf32> to vector<1x256xf32>
    %17 = vector.broadcast %14 : f32 to vector<1x256xf32>
    %18 = arith.mulf %17, %16 : vector<1x256xf32>
    %19 = arith.addf %13, %18 : vector<1x256xf32>
    %c0_13 = arith.constant 0 : index
    %c3 = arith.constant 3 : index
    %20 = memref.load %arg2[%c0_13, %c3] : memref<3x4xf32, #tpu.memory_space<smem>>
    %c0_14 = arith.constant 0 : index
    %c3_15 = arith.constant 3 : index
    %c0_16 = arith.constant 0 : index
    %21 = vector.load %arg4[%c0_14, %c3_15, %c0_16] : memref<1x4x256xf32, #tpu.memory_space<vmem>>, vector<1x1x256xf32>
    %22 = vector.shape_cast %21 : vector<1x1x256xf32> to vector<1x256xf32>
    %23 = vector.broadcast %20 : f32 to vector<1x256xf32>
    %24 = arith.mulf %23, %22 : vector<1x256xf32>
    %25 = arith.addf %19, %24 : vector<1x256xf32>
    %c0_17 = arith.constant 0 : index
    %c0_18 = arith.constant 0 : index
    %c0_19 = arith.constant 0 : index
    %26 = vector.load %arg5[%c0_17, %c0_18, %c0_19] : memref<1x3x256xf32, #tpu.memory_space<vmem>>, vector<1x1x256xf32>
    %27 = vector.shape_cast %26 : vector<1x1x256xf32> to vector<1x256xf32>
    %28 = vector.shape_cast %25 : vector<1x256xf32> to vector<1x1x256xf32>
    tpu.vector_store %arg5[%c0_17, %c0_18, %c0_19], %28 {strides = array<i32>} : memref<1x3x256xf32, #tpu.memory_space<vmem>>, vector<1x1x256xf32>,
    %c1_20 = arith.constant 1 : index
    %29 = memref.load %arg3[%c1_20] : memref<3xf32, #tpu.memory_space<smem>>
    %30 = vector.broadcast %29 : f32 to vector<1x256xf32>
    %c1_21 = arith.constant 1 : index
    %c0_22 = arith.constant 0 : index
    %31 = memref.load %arg2[%c1_21, %c0_22] : memref<3x4xf32, #tpu.memory_space<smem>>
    %c0_23 = arith.constant 0 : index
    %c0_24 = arith.constant 0 : index
    %c0_25 = arith.constant 0 : index
    %32 = vector.load %arg4[%c0_23, %c0_24, %c0_25] : memref<1x4x256xf32, #tpu.memory_space<vmem>>, vector<1x1x256xf32>
    %33 = vector.shape_cast %32 : vector<1x1x256xf32> to vector<1x256xf32>
    %34 = vector.broadcast %31 : f32 to vector<1x256xf32>
    %35 = arith.mulf %34, %33 : vector<1x256xf32>
    %36 = arith.addf %30, %35 : vector<1x256xf32>
    %c1_26 = arith.constant 1 : index
    %c1_27 = arith.constant 1 : index
    %37 = memref.load %arg2[%c1_26, %c1_27] : memref<3x4xf32, #tpu.memory_space<smem>>
    %c0_28 = arith.constant 0 : index
    %c1_29 = arith.constant 1 : index
    %c0_30 = arith.constant 0 : index
    %38 = vector.load %arg4[%c0_28, %c1_29, %c0_30] : memref<1x4x256xf32, #tpu.memory_space<vmem>>, vector<1x1x256xf32>
    %39 = vector.shape_cast %38 : vector<1x1x256xf32> to vector<1x256xf32>
    %40 = vector.broadcast %37 : f32 to vector<1x256xf32>
    %41 = arith.mulf %40, %39 : vector<1x256xf32>
    %42 = arith.addf %36, %41 : vector<1x256xf32>
    %c1_31 = arith.constant 1 : index
    %c2_32 = arith.constant 2 : index
    %43 = memref.load %arg2[%c1_31, %c2_32] : memref<3x4xf32, #tpu.memory_space<smem>>
    %c0_33 = arith.constant 0 : index
    %c2_34 = arith.constant 2 : index
    %c0_35 = arith.constant 0 : index
    %44 = vector.load %arg4[%c0_33, %c2_34, %c0_35] : memref<1x4x256xf32, #tpu.memory_space<vmem>>, vector<1x1x256xf32>
    %45 = vector.shape_cast %44 : vector<1x1x256xf32> to vector<1x256xf32>
    %46 = vector.broadcast %43 : f32 to vector<1x256xf32>
    %47 = arith.mulf %46, %45 : vector<1x256xf32>
    %48 = arith.addf %42, %47 : vector<1x256xf32>
    %c1_36 = arith.constant 1 : index
    %c3_37 = arith.constant 3 : index
    %49 = memref.load %arg2[%c1_36, %c3_37] : memref<3x4xf32, #tpu.memory_space<smem>>
    %c0_38 = arith.constant 0 : index
    %c3_39 = arith.constant 3 : index
    %c0_40 = arith.constant 0 : index
    %50 = vector.load %arg4[%c0_38, %c3_39, %c0_40] : memref<1x4x256xf32, #tpu.memory_space<vmem>>, vector<1x1x256xf32>
    %51 = vector.shape_cast %50 : vector<1x1x256xf32> to vector<1x256xf32>
    %52 = vector.broadcast %49 : f32 to vector<1x256xf32>
    %53 = arith.mulf %52, %51 : vector<1x256xf32>
    %54 = arith.addf %48, %53 : vector<1x256xf32>
    %c0_41 = arith.constant 0 : index
    %c1_42 = arith.constant 1 : index
    %c0_43 = arith.constant 0 : index
    %55 = vector.load %arg5[%c0_41, %c1_42, %c0_43] : memref<1x3x256xf32, #tpu.memory_space<vmem>>, vector<1x1x256xf32>
    %56 = vector.shape_cast %55 : vector<1x1x256xf32> to vector<1x256xf32>
    %57 = vector.shape_cast %54 : vector<1x256xf32> to vector<1x1x256xf32>
    tpu.vector_store %arg5[%c0_41, %c1_42, %c0_43], %57 {strides = array<i32>} : memref<1x3x256xf32, #tpu.memory_space<vmem>>, vector<1x1x256xf32>,
    %c2_44 = arith.constant 2 : index
    %58 = memref.load %arg3[%c2_44] : memref<3xf32, #tpu.memory_space<smem>>
    %59 = vector.broadcast %58 : f32 to vector<1x256xf32>
    %c2_45 = arith.constant 2 : index
    %c0_46 = arith.constant 0 : index
    %60 = memref.load %arg2[%c2_45, %c0_46] : memref<3x4xf32, #tpu.memory_space<smem>>
    %c0_47 = arith.constant 0 : index
    %c0_48 = arith.constant 0 : index
    %c0_49 = arith.constant 0 : index
    %61 = vector.load %arg4[%c0_47, %c0_48, %c0_49] : memref<1x4x256xf32, #tpu.memory_space<vmem>>, vector<1x1x256xf32>
    %62 = vector.shape_cast %61 : vector<1x1x256xf32> to vector<1x256xf32>
    %63 = vector.broadcast %60 : f32 to vector<1x256xf32>
    %64 = arith.mulf %63, %62 : vector<1x256xf32>
    %65 = arith.addf %59, %64 : vector<1x256xf32>
    %c2_50 = arith.constant 2 : index
    %c1_51 = arith.constant 1 : index
    %66 = memref.load %arg2[%c2_50, %c1_51] : memref<3x4xf32, #tpu.memory_space<smem>>
    %c0_52 = arith.constant 0 : index
    %c1_53 = arith.constant 1 : index
    %c0_54 = arith.constant 0 : index
    %67 = vector.load %arg4[%c0_52, %c1_53, %c0_54] : memref<1x4x256xf32, #tpu.memory_space<vmem>>, vector<1x1x256xf32>
    %68 = vector.shape_cast %67 : vector<1x1x256xf32> to vector<1x256xf32>
    %69 = vector.broadcast %66 : f32 to vector<1x256xf32>
    %70 = arith.mulf %69, %68 : vector<1x256xf32>
    %71 = arith.addf %65, %70 : vector<1x256xf32>
    %c2_55 = arith.constant 2 : index
    %c2_56 = arith.constant 2 : index
    %72 = memref.load %arg2[%c2_55, %c2_56] : memref<3x4xf32, #tpu.memory_space<smem>>
    %c0_57 = arith.constant 0 : index
    %c2_58 = arith.constant 2 : index
    %c0_59 = arith.constant 0 : index
    %73 = vector.load %arg4[%c0_57, %c2_58, %c0_59] : memref<1x4x256xf32, #tpu.memory_space<vmem>>, vector<1x1x256xf32>
    %74 = vector.shape_cast %73 : vector<1x1x256xf32> to vector<1x256xf32>
    %75 = vector.broadcast %72 : f32 to vector<1x256xf32>
    %76 = arith.mulf %75, %74 : vector<1x256xf32>
    %77 = arith.addf %71, %76 : vector<1x256xf32>
    %c2_60 = arith.constant 2 : index
    %c3_61 = arith.constant 3 : index
    %78 = memref.load %arg2[%c2_60, %c3_61] : memref<3x4xf32, #tpu.memory_space<smem>>
    %c0_62 = arith.constant 0 : index
    %c3_63 = arith.constant 3 : index
    %c0_64 = arith.constant 0 : index
    %79 = vector.load %arg4[%c0_62, %c3_63, %c0_64] : memref<1x4x256xf32, #tpu.memory_space<vmem>>, vector<1x1x256xf32>
    %80 = vector.shape_cast %79 : vector<1x1x256xf32> to vector<1x256xf32>
    %81 = vector.broadcast %78 : f32 to vector<1x256xf32>
    %82 = arith.mulf %81, %80 : vector<1x256xf32>
    %83 = arith.addf %77, %82 : vector<1x256xf32>
    %c0_65 = arith.constant 0 : index
    %c2_66 = arith.constant 2 : index
    %c0_67 = arith.constant 0 : index
    %84 = vector.load %arg5[%c0_65, %c2_66, %c0_67] : memref<1x3x256xf32, #tpu.memory_space<vmem>>, vector<1x1x256xf32>
    %85 = vector.shape_cast %84 : vector<1x1x256xf32> to vector<1x256xf32>
    %86 = vector.shape_cast %83 : vector<1x256xf32> to vector<1x1x256xf32>
    tpu.vector_store %arg5[%c0_65, %c2_66, %c0_67], %86 {strides = array<i32>} : memref<1x3x256xf32, #tpu.memory_space<vmem>>, vector<1x1x256xf32>,
    return
  }
  func.func @transform_0(%arg0: i32, %arg1: i32) -> (i32, i32) {
    %c0_i32 = arith.constant 0 : i32
    %c0_i32_0 = arith.constant 0 : i32
    %c0_i32_1 = arith.constant 0 : i32
    return %c0_i32, %c0_i32_0 : i32, i32
  }
  func.func @transform_1(%arg0: i32, %arg1: i32) -> i32 {
    %c0_i32 = arith.constant 0 : i32
    %c0_i32_0 = arith.constant 0 : i32
    return %c0_i32 : i32
  }
  func.func @transform_2(%arg0: i32, %arg1: i32) -> (i32, i32, i32) {
    %c0_i32 = arith.constant 0 : i32
    %c0_i32_0 = arith.constant 0 : i32
    return %arg0, %c0_i32, %arg1 : i32, i32, i32
  }
  func.func @transform_3(%arg0: i32, %arg1: i32) -> (i32, i32, i32) {
    %c0_i32 = arith.constant 0 : i32
    %c0_i32_0 = arith.constant 0 : i32
    return %arg0, %c0_i32, %arg1 : i32, i32, i32
  }
}

</mosaic_0001>

<bundles_post_ra>
// kernel: outconv_forward.1
= control target key start
LH: loop header
LB: loop body
LE: loop exit
PB: predicated region body
PF: predicated region fallthrough
CT: control target
= control target key end

     0   :  { %8 = vsyncpa [#allocation5], 0  ;;  %s1011_s0 = inlined_call_operand.hbm [shape: f32[3,4], index: 0, kind: input, shape index: {}]   ;;  %s1012_s1 = inlined_call_operand.hbm [shape: f32[3], index: 1, kind: input, shape index: {}]   ;;  %s1013_s2 = inlined_call_operand.hbm [shape: f32[2,4,256], index: 2, kind: input, shape index: {}]   ;;  %s1014_s3 = inlined_call_operand.hbm [shape: f32[2,3,256], index: 3, kind: output, shape index: {}]  }
   0x1   :  { %9 = vsyncpa [#allocation7], 0 }
   0x2   :  { %10 = vsyncpa [#allocation3], 0 }
   0x3   :  { %12 = vsyncpa [#allocation3 + $0x1], 0 }
   0x4   :  { %13 = vsyncpa [#allocation4], 0 }
   0x5   :  { %15 = vsyncpa [#allocation4 + $0x1], 0  ;;  %s731_s12 = smov 0   ;;  %s733_s13 = smov 0  }
   0x6   :  { %s735_s14 = smov 0   ;;  %s737_s15 = smov 0  }
   0x7   :  { %s739_s16 = smov 0   ;;  %s741_s17 = smov 0  }
   0x8 LB: > { %s431_s18 = sadd.s32 4294967295, %s705_s17   ;;  %s432_s19 = sadd.s32 4294967294, %s705_s17   ;;  %s705_s17 = sphi %s741_s17, %s21_s17   ;;  %s701_s16 = sphi %s739_s16, %s1041_s16   ;;  %s697_s15 = sphi %s737_s15, %s1040_s15   ;;  %s693_s14 = sphi %s735_s14, %s1039_s14   ;;  %s689_s13 = sphi %s733_s13, %s1038_s13   ;;  %s685_s12 = sphi %s731_s12, %s1037_s12  }
   0x9   : > { %p97_p0 = scmp.ne.s32.totalorder %s689_s13, %s685_s12  ;;  %p765_p1 = scmp.eq.s32.totalorder %s431_s18, 0 }
   0xa   : > { %p769_p2 = scmp.eq.s32.totalorder %s431_s18, 1  ;;  %p129_p3 = scmp.eq.s32.totalorder %s432_s19, 1 }
   0xb   : > { %s1019_s20 = scalar_select %p765_p1, 1, 0 }
   0xc   : > { %p775_p4 = por %p765_p1, %p97_p0  ;;  %p433_p5 = scmp.ge.s32.totalorder %s705_s17, 1 }
   0xd   : > { %p780_p6 = por %p129_p3, %p97_p0  ;;  %p136_p7 = scmp.lt.s32.totalorder %s705_s17, 3 }
   0xe   : > { %s1021_s22 = scalar_select %p775_p4, 1, 0 }
   0xf   : > { %s1022_s23 = scalar_select %p780_p6, 1, 0 }
  0x10   : > { %p785_p8 = pnand %p433_p5, %p136_p7  ;;  %s33_s26 = sadd.s32 1, %s701_s16 }
  0x11   : > { %p799_p12 = scmp.ge.s32.totalorder %s33_s26, 2  ;;  %s84_s28 = sadd.s32 1, %s693_s14 }
  0x12   : > { %p488_p10 = pneg %p785_p8  ;;  %s559_s4 = scalar_lea.hbm %s1011_s0, 64 }
  0x13   : > { %p560_p0 = scmp.ne.s32.totalorder %s1011_s0, %s559_s4 }
  0x14   : > { %p794_p11 = pnand %p488_p10, %p765_p1  ;;  %p566_p10 = scmp.lt.u32.totalorder %s559_s4, %s1011_s0 }
  0x16   : > { %p561_p3 = pneg %p794_p11 }
  0x18   : > { %p562_p5 = pnand %p561_p3, %p560_p0 }
  0x1a   : > { %p563_p7 = pneg %p562_p5 }
  0x1c   : > { %p568_p9 = pnand %p566_p10, %p563_p7 }
  0x1e   : > { %571 = shalt.err (!%p568_p9)
}
  0x1f   : > { %s707_s9 = smov [#allocation2]   ;;  %s572_s29 = scalar_lea.hbm %s1012_s1, 16 }
  0x20   : > { %491 = dma.hbm_to_smem (!%p794_p11), %s1011_s0, 64, %s707_s9, [#allocation5]  }
  0x21   : > { %p573_p0 = scmp.ne.s32.totalorder %s1012_s1, %s572_s29  ;;  %p579_p9 = scmp.lt.u32.totalorder %s572_s29, %s1012_s1 }
  0x23   : > { %p575_p5 = pnand %p573_p0, %p561_p3 }
  0x25   : > { %p576_p13 = pneg %p575_p5 }
  0x27   : > { %p581_p7 = pnand %p579_p9, %p576_p13 }
  0x29   : > { %584 = shalt.err (!%p581_p7)
}
  0x2a   : > { %s708_s7 = smov [#allocation6]   ;;  %s1043_s26 = smov (%p799_p12, %s33_s26), 0 }
  0x2b   : > { %494 = dma.hbm_to_smem (!%p794_p11), %s1012_s1, 16, %s708_s7, [#allocation7]  }
  0x2c   : > { %p92_p13 = scmp.eq.s32.totalorder %s705_s17, 0  ;;  %p1026_p3 = scmp.ne.s32.totalorder %s693_s14, %s689_s13 }
  0x2d   : > { %s79_s10 = ssub.s32 %s701_s16, %s1043_s26  ;;  %p505_p0 = scmp.lt.s32.totalorder %s705_s17, 2 }
  0x2e   : > { %p846_p10 = por %p769_p2, %p1026_p3  ;;  %p82_p5 = scmp.eq.s32.totalorder %s79_s10, 0 }
  0x2f   : > { %p1028_p9 = pmov %p1026_p3  ;;  %s167_s11 = sand.u32 1, %s693_s14  }
  0x30   : > { %s1027_s25 = scalar_select %p846_p10, 1, 0 }
  0x31   : > { %p93_p7 = por %p92_p13, %p1028_p9  ;;  %s474_s18 = sshll.u32 %s701_s16, 7 }
  0x32   : > { %s861_s19 = scalar_select %p82_p5, %s693_s14, %s84_s28  }
  0x33   : > { %s437_s27 = sshll.u32 %s167_s11, 3  ;;  %s866_s5 = scalar_lea.hbm %s1013_s2, %s474_s18 }
  0x34   : > { %s171_s21 = scalar_lea.vmem [#allocation8], %s437_s27  ;;  %p868_p2 = pnand %p505_p0, %p93_p7 }
  0x35   : > { %s181_s4 = sshll.u32 %s171_s21, 4  ;;  %s168_s28 = scalar_lea.sflag [#allocation3], %s167_s11  ;;  %s872_s4 = int_to_ptr.vmem [resolvable:$true] %s181_s4 }
  0x36   : > { %s585_s7 = scalar_lea.hbm %s866_s5, 128  ;;  %p587_p12 = pneg %p868_p2 }
  0x37   : > { %p586_p11 = scmp.ne.s32.totalorder %s866_s5, %s585_s7  ;;  %s590_s10 = scalar_lea.hbm %s1013_s2, 256 }
  0x38   : > { %p591_p0 = scmp.lt.u32.totalorder %s866_s5, %s1013_s2  ;;  %p592_p5 = scmp.lt.u32.totalorder %s590_s10, %s585_s7 }
  0x39   : > { %p588_p13 = pnand %p587_p12, %p586_p11  ;;  %p594_p7 = scmp.lt.u32.totalorder %s585_s7, %s866_s5 }
  0x3a   : > { %p593_p9 = por %p592_p5, %p591_p0 }
  0x3b   : > { %p589_p3 = pneg %p588_p13 }
  0x3c   : > { %p595_p6 = por %p594_p7, %p593_p9 }
  0x3e   : > { %p596_p10 = pnand %p595_p6, %p589_p3 }
  0x40   : > { %599 = shalt.err (!%p596_p10)
}
  0x41   : > { %s600_s11 = scalar_lea.vmem %s872_s4, 128  ;;  %s709_s29 = smov [#allocation8]  }
  0x42   : > { %p601_p11 = scmp.ne.s32.totalorder %s872_s4, %s600_s11  ;;  %s605_s30 = sshll.u32 %s709_s29, 4  ;;  %s606_s30 = int_to_ptr.vmem [resolvable:$false] %s605_s30 }
  0x43   : > { %s607_s21 = scalar_lea.vmem %s606_s30, 256  ;;  %p608_p1 = scmp.lt.s32.totalorder %s872_s4, %s606_s30 }
  0x44   : > { %p603_p13 = pnand %p601_p11, %p587_p12  ;;  %p609_p0 = scmp.lt.s32.totalorder %s607_s21, %s600_s11 }
  0x46   : > { %p604_p4 = pneg %p603_p13  ;;  %p610_p5 = por %p609_p0, %p608_p1 }
  0x48   : > { %p611_p9 = pnand %p610_p5, %p604_p4 }
  0x4a   : > { %614 = shalt.err (!%p611_p9)
}
  0x4b   : > { %498 = dma.hbm_to_vmem [thread:$0]  (!%p868_p2), %s866_s5, 128, %s872_s4, %s168_s28  }
  0x4c   : > { %190 = sbr.rel (%p785_p8) target bundleno = 128 (0x80), region = 32  ;;  %p1030_p6 = scmp.ne.s32.totalorder (!%p785_p8), %s1019_s20, 0 }
  0x53   : > { %668 = dma.done.wait (%p1030_p6), [#allocation5], 64  }
  0x54   : > { %670 = vsyncadd (%p1030_p6), [#allocation5], 4294967232 }
  0x55   : > { %672 = dma.done.wait (%p1030_p6), [#allocation7], 16  }
  0x56   : > { %674 = vsyncadd (%p1030_p6), [#allocation7], 4294967280  ;;  %s910_s6 = sand.u32 1, %s689_s13   ;;  %p1031_p1 = scmp.ne.s32.totalorder %s1021_s22, 0 }
  0x57   : > { %s443_s24 = sshll.u32 %s910_s6, 3  ;;  %s201_s5 = scalar_lea.sflag [#allocation3], %s910_s6 }
  0x58   : > { %s916_s4 = scalar_lea.vmem [#allocation8], %s443_s24 }
  0x59   : > { %676 = dma.done.wait (%p1031_p1), %s201_s5, 128  }
  0x5a   : > { %678 = vsyncadd (%p1031_p1), %s201_s5, 4294967168 }
  0x5b   : > { %209 = sfence }
  0x5c   : > { %s230_s20 = sld [smem:[#allocation6]]  ;;  %s445_s7 = sld [smem:[#allocation2 + $0x1]]  ;;  %v233_v0 = vld [vmem:[%s916_s4] ss:$4 sm:$0x3]  ;;  %v255_v15 = vlaneseq }
  0x5d   : > { %s232_s28 = sld [smem:[#allocation2]]  ;;  %s447_s8 = sld [smem:[#allocation2 + $0x2]]  ;;  %v446_v1 = vld [vmem:[%s916_s4 + $0x1] ss:$4 sm:$0x3] }
  0x5e   : > { %s449_s9 = sld [smem:[#allocation2 + $0x3]]  ;;  %s923_s10 = sld [smem:[#allocation6 + $0x1]]  ;;  %v448_v2 = vld [vmem:[%s916_s4 + $0x2] ss:$4 sm:$0x3]  ;;  %vm941_vm0 = vcmp.lt.s32.totalorder %v255_v15, 256 }
  0x5f   : > { %s452_s18 = sld [smem:[#allocation2 + $0x80]]  ;;  %s453_s27 = sld [smem:[#allocation2 + $0x81]]  ;;  %v450_v6 = vld [vmem:[%s916_s4 + $0x3] ss:$4 sm:$0x3] }
  0x60   : > { %s455_s22 = sld [smem:[#allocation2 + $0x82]]  ;;  %v263_v10 = vld [vmem:[%s916_s4] ss:$4 sm:$0x3]  ;;  %s457_s11 = sld [smem:[#allocation2 + $0x83]] }
  0x61   : > { %s929_s29 = sld [smem:[#allocation6 + $0x2]]  ;;  %s931_s30 = sld [smem:[#allocation2 + $0x100]]  ;;  %v454_v14 = vld [vmem:[%s916_s4 + $0x1] ss:$4 sm:$0x3] }
  0x62   : > { %v231_v3 = vstv %s230_s20  ;;  %v240_v5 = vstv %s445_s7  ;;  %s462_s21 = sld [smem:[#allocation2 + $0x101]]  ;;  %v456_v18 = vld [vmem:[%s916_s4 + $0x2] ss:$4 sm:$0x3]  ;;  %s936_s5 = sld [smem:[#allocation2 + $0x102]] }
  0x63   : > { %v234_v4 = vstv %s232_s28  ;;  %v241_v8 = vmul.f32 %v446_v1, %v240_v5  ;;  %v246_v9 = vstv %s447_s8  ;;  %v458_v23 = vld [vmem:[%s916_s4 + $0x3] ss:$4 sm:$0x3]  ;;  %s466_s20 = sld [smem:[#allocation2 + $0x103]]  ;;  %s227_s28 = scalar_lea.vmem [#allocation9], %s443_s24 }
  0x64   : > { %v235_v7 = vmul.f32 %v234_v4, %v233_v0  ;;  %v252_v11 = vstv %s449_s9  ;;  %v247_v13 = vmul.f32 %v448_v2, %v246_v9  ;;  %v261_v16 = vstv %s923_s10  ;;  %v287_v26 = vld [vmem:[%s916_s4] ss:$4 sm:$0x3]  ;;  %v463_v31 = vld [vmem:[%s916_s4 + $0x1] ss:$4 sm:$0x3] }
  0x65   : > { %v264_v17 = vstv %s452_s18  ;;  %v253_v20 = vmul.f32 %v450_v6, %v252_v11  ;;  %v269_v22 = vstv %s453_s27  ;;  %v465_v36 = vld [vmem:[%s916_s4 + $0x2] ss:$4 sm:$0x3]  ;;  %v467_v43 = vld [vmem:[%s916_s4 + $0x3] ss:$4 sm:$0x3] }
  0x66   : > { %v236_v12 = vadd.f32 %v235_v7, %v231_v3  ;;  %v265_v21 = vmul.f32 %v264_v17, %v263_v10  ;;  %v270_v24 = vmul.f32 %v454_v14, %v269_v22  ;;  %v274_v25 = vstv %s455_s22  ;;  %s325_s7 = sshll.u32 %s227_s28, 4  ;;  %s475_s8 = sshll.u32 %s697_s15, 7  ;;  %s957_s7 = int_to_ptr.vmem [resolvable:$true] %s325_s7 }
  0x67   : > { %v275_v29 = vmul.f32 %v456_v18, %v274_v25  ;;  %v279_v30 = vstv %s457_s11  ;;  %v285_v34 = vstv %s929_s29  ;;  %v288_v35 = vstv %s931_s30  ;;  %s962_s9 = scalar_lea.hbm %s1014_s3, %s475_s8  ;;  %s309_s10 = scalar_lea.sflag [#allocation4], %s910_s6 }
  0x68   : > { %v242_v19 = vadd.f32 %v241_v8, %v236_v12  ;;  %v266_v28 = vadd.f32 %v265_v21, %v261_v16  ;;  %v280_v33 = vmul.f32 %v458_v23, %v279_v30  ;;  %v289_v39 = vmul.f32 %v288_v35, %v287_v26  ;;  %s615_s15 = scalar_lea.vmem %s957_s7, 128  ;;  %p1034_p8 = scmp.ne.s32.totalorder %s1027_s25, 0 }
  0x69   : > { %v293_v40 = vstv %s462_s21  ;;  %v298_v42 = vstv %s936_s5  ;;  %v303_v47 = vstv %s466_s20  ;;  %p616_p4 = scmp.ne.s32.totalorder %s957_s7, %s615_s15  ;;  %s710_s18 = smov [#allocation9]  }
  0x6a   : > { %v248_v27 = vadd.f32 %v247_v13, %v242_v19  ;;  %v271_v38 = vadd.f32 %v270_v24, %v266_v28  ;;  %v294_v41 = vmul.f32 %v463_v31, %v293_v40  ;;  %v290_v45 = vadd.f32 %v289_v39, %v285_v34  ;;  %s619_s27 = sshll.u32 %s710_s18, 4  ;;  %s620_s27 = int_to_ptr.vmem [resolvable:$false] %s619_s27 }
  0x6b   : > { %v299_v46 = vmul.f32 %v465_v36, %v298_v42  ;;  %v304_v50 = vmul.f32 %v467_v43, %v303_v47  ;;  %p617_p10 = pnand %p616_p4, %p1034_p8  ;;  %s621_s22 = scalar_lea.vmem %s620_s27, 256 }
  0x6c   : > { %v254_v37 = vadd.f32 %v253_v20, %v248_v27  ;;  %v276_v44 = vadd.f32 %v275_v29, %v271_v38  ;;  %v295_v49 = vadd.f32 %v294_v41, %v290_v45  ;;  %p622_p12 = scmp.lt.s32.totalorder %s957_s7, %s620_s27  ;;  %p623_p3 = scmp.lt.s32.totalorder %s621_s22, %s615_s15 }
  0x6d   : > { %p618_p2 = pneg %p617_p10 }
  0x6e   : > { %259 = vst.msk [vmem:[%s227_s28] ss:$4 sm:$0x3] %vm941_vm0, %v254_v37  ;;  %v281_v48 = vadd.f32 %v280_v33, %v276_v44  ;;  %v300_v51 = vadd.f32 %v299_v46, %v295_v49  ;;  %p624_p7 = por %p623_p3, %p622_p12 }
  0x70   : > { %459 = vst.msk [vmem:[%s227_s28 + $0x1] ss:$4 sm:$0x3] %vm941_vm0, %v281_v48  ;;  %v305_v52 = vadd.f32 %v304_v50, %v300_v51  ;;  %p625_p11 = pnand %p624_p7, %p618_p2 }
  0x72   : > { %468 = vst.msk [vmem:[%s227_s28 + $0x2] ss:$4 sm:$0x3] %vm941_vm0, %v305_v52 }
  0x73   : > { %628 = shalt.err (!%p625_p11)
}
  0x74   : > { %s629_s6 = scalar_lea.hbm %s962_s9, 128  ;;  %s633_s30 = scalar_lea.hbm %s1014_s3, 256 }
  0x75   : > { %p630_p13 = scmp.ne.s32.totalorder %s962_s9, %s629_s6  ;;  %p634_p9 = scmp.lt.u32.totalorder %s962_s9, %s1014_s3 }
  0x76   : > { %p635_p6 = scmp.lt.u32.totalorder %s633_s30, %s629_s6  ;;  %p637_p4 = scmp.lt.u32.totalorder %s629_s6, %s962_s9 }
  0x77   : > { %p631_p0 = pnand %p630_p13, %p1034_p8 }
  0x78   : > { %p636_p1 = por %p635_p6, %p634_p9 }
  0x79   : > { %p632_p5 = pneg %p631_p0 }
  0x7a   : > { %p638_p10 = por %p637_p4, %p636_p1 }
  0x7c   : > { %p639_p2 = pnand %p638_p10, %p632_p5 }
  0x7e   : > { %642 = shalt.err (!%p639_p2)
}
  0x7f   : > { %486 = dma.vmem_to_hbm [thread:$0]  (%p1034_p8), %s957_s7, 128, %s962_s9, %s309_s10  }
  0x80 PF: > { %s337_s20 = sand.u32 1, %s685_s12   ;;  %p1035_p12 = scmp.ne.s32.totalorder %s1022_s23, 0 }
  0x81   : > { %p1036_p3 = scmp.ge.s32.totalorder %s705_s17, 2  ;;  %s338_s28 = scalar_lea.sflag [#allocation4], %s337_s20 }
  0x83   : > { %p500_p7 = pnand %p1036_p3, %p1035_p12 }
  0x85   : > { %680 = dma.done.wait (!%p500_p7), %s338_s28, 128  }
  0x86   : > { %682 = vsyncadd (!%p500_p7), %s338_s28, 4294967168  ;;  %s21_s17 = sadd.s32 1, %s705_s17   ;;  %s1037_s12 = smov %s689_s13 }
  0x87   : > { %p18_p11 = scmp.ge.s32.totalorder %s21_s17, 4   ;;  %s1038_s13 = smov %s693_s14 }
  0x88   : > { %s1039_s14 = smov %s861_s19  ;;  %s1040_s15 = smov %s701_s16 }
  0x89   : > { %s1041_s16 = smov %s1043_s26  ;;  %20 = sbr.rel (!%p18_p11) target bundleno = 8 (0x8), region = 91 }
  0x90   :  { %343 = vsyncpa [#allocation3], 1 }
  0x91   :  { %345 = vsyncpa [#allocation3 + $0x1], 1 }
  0x92   :  { %346 = vsyncpa [#allocation4], 1 }
  0x93   :  { %348 = vsyncpa [#allocation4 + $0x1], 1 }
  0x94   :  { %349 = vsyncpa [#allocation5], 1 }
  0x95   :  { %351 = vsyncpa [#allocation5 + $0x1], 1 }
  0x96   :  { %352 = vsyncpa [#allocation7], 1 }

</bundles_post_ra>
